<compile_context>
chip_gen: v7x
topology: tpu7x:2x2x1
jax: 0.10.0
libtpu: 0.0.40
codegen_flags: <defaults>
</compile_context>

<pallas_src>
import jax
import jax.numpy as jnp
from jax.experimental import pallas as pl
from jax.experimental.pallas import tpu as pltpu


def _round_up(x, m):
    return (x + m - 1) // m * m


def _make_tprod_kernel(n3, nl, bpad):
    """Kernel: build bcirc(Coef) in a VMEM scratch with pltpu.roll, one matmul.

    Ref shapes (all VMEM resident for the single invocation):
      z2_ref  : (n1, n3*bpad)     z2[i, m*bpad + n]      = z[i, n, m]
      cf_ref  : (bpad, n3*nl)     cf[n, k*nl + l]        = Coef[n, l, k]
      out_ref : (n1, n3*nl)       out[i, k*nl + l]       = z_c[i, l, k]
      slab_ref: (n3*bpad, n3*nl)  slab[m*bpad+n, k*nl+l] = Coef[n, l, (k-m)%n3]
    Rows n >= true batch are zero-padded and contribute nothing.
    """

    def kernel(z2_ref, cf_ref, out_ref, slab_ref):
        cf = cf_ref[...]
        # Rolling the k-major / l-minor lane axis by m*nl realizes the tube
        # shift (k - m) mod n3 without mixing up l (the wrap of the full lane
        # axis wraps k correctly because l is the inner index). Static shifts
        # -> cheap XLU rolls; stores are aligned full (bpad, n3*nl) tiles.
        for m in range(n3):
            rolled = cf if m == 0 else pltpu.roll(cf, shift=m * nl, axis=1)
            slab_ref[pl.ds(m * bpad, bpad), :] = rolled
        # Single lane-dense MXU matmul, contraction depth K = n3*bpad (512),
        # output written exactly once.
        out_ref[...] = jnp.dot(z2_ref[...], slab_ref[...],
                               preferred_element_type=jnp.float32)

    return kernel


def tselfexpressive_forward(z, coef):
    """Forward pass of TSelfexpressive: returns (tprod(z, Coef), Coef)."""
    n1, n2, n3 = z.shape        # (features, batch, tubes)
    nb, nl, nc = coef.shape     # (batch, batch, tubes)
    assert n2 == nb and n3 == nc

    bpad = _round_up(nb, 8)     # pad batch rows up to the 8-sublane tile

    # ---- wrapper-side layout glue: a few KB of transpose/pad/reshape ------
    z2 = jnp.transpose(z, (0, 2, 1))                          # (n1, n3, B)
    z2 = jnp.pad(z2, ((0, 0), (0, 0), (0, bpad - nb)))        # (n1, n3, bpad)
    z2 = z2.reshape(n1, n3 * bpad)                            # z2[i, m*bpad+n]
    cf = jnp.transpose(coef, (0, 2, 1)).reshape(nb, n3 * nl)  # cf[n, k*nl+l]
    cf = jnp.pad(cf, ((0, bpad - nb), (0, 0)))                # (bpad, n3*nl)

    flops = 2 * n1 * nb * nl * n3 * n3                        # ~1 MFLOP here
    bytes_accessed = 4 * (z2.size + cf.size + n1 * n3 * nl)   # ~30 KB

    out2 = pl.pallas_call(
        _make_tprod_kernel(n3, nl, bpad),
        out_shape=jax.ShapeDtypeStruct((n1, n3 * nl), jnp.float32),
        in_specs=[
            pl.BlockSpec(memory_space=pltpu.MemorySpace.VMEM),
            pl.BlockSpec(memory_space=pltpu.MemorySpace.VMEM),
        ],
        out_specs=pl.BlockSpec(memory_space=pltpu.MemorySpace.VMEM),
        scratch_shapes=[pltpu.VMEM((n3 * bpad, n3 * nl), jnp.float32)],
        cost_estimate=pl.CostEstimate(
            flops=flops, transcendentals=0, bytes_accessed=bytes_accessed),
    )(z2, cf)

    # Fold back: out2[i, k*nl + l] == z_c[i, l, k].
    z_c = out2.reshape(n1, n3, nl).transpose(0, 2, 1)         # (n1, B, n3)
    return z_c, coef
    # TODO(synk): for large batch sizes the (n3*Bp, n3*B) VMEM slab stops
    # fitting (earliest on v7x's 64 MiB): switch to a grid over (l, k) output
    # tiles (slab built per-tile from rolled Coef column blocks), keep the K
    # blocks multiples of 128 (v5e) / 256 (v6e, v7x), and optionally cast the
    # operands to bf16 (f32 accumulation) if the accuracy budget allows.


def tprod_ref(a, b):
    """Pure-JAX t-product reference (block-circulant definition)."""
    n3 = a.shape[2]
    k = jnp.arange(n3)[:, None]
    j = jnp.arange(n3)[None, :]
    ag = a[:, :, (k - j) % n3]                 # (n1, n2, k, j)
    return jnp.einsum("inkj,nlj->ilk", ag, b, precision="highest")


if __name__ == "__main__":
    key = jax.random.PRNGKey(0)
    batch_size = 4
    n1, n3 = 8, 64

    # Deterministic parameter init, exactly as the module's __init__.
    coef_param = 0.0001 * jnp.ones(
        (batch_size, batch_size, n3), dtype=jnp.float32)
    kz, kc = jax.random.split(key)
    # Example input z with second dim = batch_size (required by tprod(z, Coef)).
    z = jax.random.normal(kz, (n1, batch_size, n3), dtype=jnp.float32)

    fwd = jax.jit(tselfexpressive_forward)
    z_c, coef_out = fwd(z, coef_param)
    jax.block_until_ready((z_c, coef_out))

    assert z_c.shape == (n1, batch_size, n3)
    assert coef_out.shape == (batch_size, batch_size, n3)

    ref = tprod_ref(z, coef_param)
    if not bool(jnp.allclose(z_c, ref, atol=2e-5, rtol=2e-3)):
        raise ValueError(
            f"kernel mismatch (init Coef), "
            f"max abs err={float(jnp.max(jnp.abs(z_c - ref)))}")

    # Extra check with a non-degenerate Coef: the constant init is symmetric
    # across the tube index, so it alone cannot catch shift-direction bugs.
    coef_rand = 0.01 * jax.random.normal(
        kc, (batch_size, batch_size, n3), dtype=jnp.float32)
    z_c2, _ = fwd(z, coef_rand)
    jax.block_until_ready(z_c2)
    ref2 = tprod_ref(z, coef_rand)
    if not bool(jnp.allclose(z_c2, ref2, atol=1e-4, rtol=2e-3)):
        raise ValueError(
            f"kernel mismatch (random Coef), "
            f"max abs err={float(jnp.max(jnp.abs(z_c2 - ref2)))}")

    print("KERNEL_OK")
</pallas_src>

<mosaic_0001>
module attributes {stable_mosaic.version = 11 : i64} {
  func.func @kernel(%arg0: memref<8x512xf32, #tpu.memory_space<vmem>>, %arg1: memref<8x256xf32, #tpu.memory_space<vmem>>, %arg2: memref<8x256xf32, #tpu.memory_space<vmem>>, %arg3: memref<512x256xf32, #tpu.memory_space<vmem>>) attributes {dimension_semantics = [], scalar_prefetch = 0 : i64, scratch_operands = 1 : i64, tpu.core_type = #tpu.core_type<tc>} {
    %c0 = arith.constant 0 : index
    %c0_0 = arith.constant 0 : index
    %0 = vector.load %arg1[%c0, %c0_0] : memref<8x256xf32, #tpu.memory_space<vmem>>, vector<8x256xf32>
    %c0_1 = arith.constant 0 : index
    %c0_2 = arith.constant 0 : index
    %1 = vector.load %arg3[%c0_1, %c0_2] : memref<512x256xf32, #tpu.memory_space<vmem>>, vector<8x256xf32>
    tpu.vector_store %arg3[%c0_1, %c0_2], %0 {strides = array<i32>} : memref<512x256xf32, #tpu.memory_space<vmem>>, vector<8x256xf32>,
    %c4_i32 = arith.constant 4 : i32
    %2 = tpu.dynamic_rotate %0 by %c4_i32 dim 1 : vector<8x256xf32>, i32 -> vector<8x256xf32>
    %c8 = arith.constant 8 : index
    %c0_3 = arith.constant 0 : index
    %3 = vector.load %arg3[%c8, %c0_3] : memref<512x256xf32, #tpu.memory_space<vmem>>, vector<8x256xf32>
    tpu.vector_store %arg3[%c8, %c0_3], %2 {strides = array<i32>} : memref<512x256xf32, #tpu.memory_space<vmem>>, vector<8x256xf32>,
    %c8_i32 = arith.constant 8 : i32
    %4 = tpu.dynamic_rotate %0 by %c8_i32 dim 1 : vector<8x256xf32>, i32 -> vector<8x256xf32>
    %c16 = arith.constant 16 : index
    %c0_4 = arith.constant 0 : index
    %5 = vector.load %arg3[%c16, %c0_4] : memref<512x256xf32, #tpu.memory_space<vmem>>, vector<8x256xf32>
    tpu.vector_store %arg3[%c16, %c0_4], %4 {strides = array<i32>} : memref<512x256xf32, #tpu.memory_space<vmem>>, vector<8x256xf32>,
    %c12_i32 = arith.constant 12 : i32
    %6 = tpu.dynamic_rotate %0 by %c12_i32 dim 1 : vector<8x256xf32>, i32 -> vector<8x256xf32>
    %c24 = arith.constant 24 : index
    %c0_5 = arith.constant 0 : index
    %7 = vector.load %arg3[%c24, %c0_5] : memref<512x256xf32, #tpu.memory_space<vmem>>, vector<8x256xf32>
    tpu.vector_store %arg3[%c24, %c0_5], %6 {strides = array<i32>} : memref<512x256xf32, #tpu.memory_space<vmem>>, vector<8x256xf32>,
    %c16_i32 = arith.constant 16 : i32
    %8 = tpu.dynamic_rotate %0 by %c16_i32 dim 1 : vector<8x256xf32>, i32 -> vector<8x256xf32>
    %c32 = arith.constant 32 : index
    %c0_6 = arith.constant 0 : index
    %9 = vector.load %arg3[%c32, %c0_6] : memref<512x256xf32, #tpu.memory_space<vmem>>, vector<8x256xf32>
    tpu.vector_store %arg3[%c32, %c0_6], %8 {strides = array<i32>} : memref<512x256xf32, #tpu.memory_space<vmem>>, vector<8x256xf32>,
    %c20_i32 = arith.constant 20 : i32
    %10 = tpu.dynamic_rotate %0 by %c20_i32 dim 1 : vector<8x256xf32>, i32 -> vector<8x256xf32>
    %c40 = arith.constant 40 : index
    %c0_7 = arith.constant 0 : index
    %11 = vector.load %arg3[%c40, %c0_7] : memref<512x256xf32, #tpu.memory_space<vmem>>, vector<8x256xf32>
    tpu.vector_store %arg3[%c40, %c0_7], %10 {strides = array<i32>} : memref<512x256xf32, #tpu.memory_space<vmem>>, vector<8x256xf32>,
    %c24_i32 = arith.constant 24 : i32
    %12 = tpu.dynamic_rotate %0 by %c24_i32 dim 1 : vector<8x256xf32>, i32 -> vector<8x256xf32>
    %c48 = arith.constant 48 : index
    %c0_8 = arith.constant 0 : index
    %13 = vector.load %arg3[%c48, %c0_8] : memref<512x256xf32, #tpu.memory_space<vmem>>, vector<8x256xf32>
    tpu.vector_store %arg3[%c48, %c0_8], %12 {strides = array<i32>} : memref<512x256xf32, #tpu.memory_space<vmem>>, vector<8x256xf32>,
    %c28_i32 = arith.constant 28 : i32
    %14 = tpu.dynamic_rotate %0 by %c28_i32 dim 1 : vector<8x256xf32>, i32 -> vector<8x256xf32>
    %c56 = arith.constant 56 : index
    %c0_9 = arith.constant 0 : index
    %15 = vector.load %arg3[%c56, %c0_9] : memref<512x256xf32, #tpu.memory_space<vmem>>, vector<8x256xf32>
    tpu.vector_store %arg3[%c56, %c0_9], %14 {strides = array<i32>} : memref<512x256xf32, #tpu.memory_space<vmem>>, vector<8x256xf32>,
    %c32_i32 = arith.constant 32 : i32
    %16 = tpu.dynamic_rotate %0 by %c32_i32 dim 1 : vector<8x256xf32>, i32 -> vector<8x256xf32>
    %c64 = arith.constant 64 : index
    %c0_10 = arith.constant 0 : index
    %17 = vector.load %arg3[%c64, %c0_10] : memref<512x256xf32, #tpu.memory_space<vmem>>, vector<8x256xf32>
    tpu.vector_store %arg3[%c64, %c0_10], %16 {strides = array<i32>} : memref<512x256xf32, #tpu.memory_space<vmem>>, vector<8x256xf32>,
    %c36_i32 = arith.constant 36 : i32
    %18 = tpu.dynamic_rotate %0 by %c36_i32 dim 1 : vector<8x256xf32>, i32 -> vector<8x256xf32>
    %c72 = arith.constant 72 : index
    %c0_11 = arith.constant 0 : index
    %19 = vector.load %arg3[%c72, %c0_11] : memref<512x256xf32, #tpu.memory_space<vmem>>, vector<8x256xf32>
    tpu.vector_store %arg3[%c72, %c0_11], %18 {strides = array<i32>} : memref<512x256xf32, #tpu.memory_space<vmem>>, vector<8x256xf32>,
    %c40_i32 = arith.constant 40 : i32
    %20 = tpu.dynamic_rotate %0 by %c40_i32 dim 1 : vector<8x256xf32>, i32 -> vector<8x256xf32>
    %c80 = arith.constant 80 : index
    %c0_12 = arith.constant 0 : index
    %21 = vector.load %arg3[%c80, %c0_12] : memref<512x256xf32, #tpu.memory_space<vmem>>, vector<8x256xf32>
    tpu.vector_store %arg3[%c80, %c0_12], %20 {strides = array<i32>} : memref<512x256xf32, #tpu.memory_space<vmem>>, vector<8x256xf32>,
    %c44_i32 = arith.constant 44 : i32
    %22 = tpu.dynamic_rotate %0 by %c44_i32 dim 1 : vector<8x256xf32>, i32 -> vector<8x256xf32>
    %c88 = arith.constant 88 : index
    %c0_13 = arith.constant 0 : index
    %23 = vector.load %arg3[%c88, %c0_13] : memref<512x256xf32, #tpu.memory_space<vmem>>, vector<8x256xf32>
    tpu.vector_store %arg3[%c88, %c0_13], %22 {strides = array<i32>} : memref<512x256xf32, #tpu.memory_space<vmem>>, vector<8x256xf32>,
    %c48_i32 = arith.constant 48 : i32
    %24 = tpu.dynamic_rotate %0 by %c48_i32 dim 1 : vector<8x256xf32>, i32 -> vector<8x256xf32>
    %c96 = arith.constant 96 : index
    %c0_14 = arith.constant 0 : index
    %25 = vector.load %arg3[%c96, %c0_14] : memref<512x256xf32, #tpu.memory_space<vmem>>, vector<8x256xf32>
    tpu.vector_store %arg3[%c96, %c0_14], %24 {strides = array<i32>} : memref<512x256xf32, #tpu.memory_space<vmem>>, vector<8x256xf32>,
    %c52_i32 = arith.constant 52 : i32
    %26 = tpu.dynamic_rotate %0 by %c52_i32 dim 1 : vector<8x256xf32>, i32 -> vector<8x256xf32>
    %c104 = arith.constant 104 : index
    %c0_15 = arith.constant 0 : index
    %27 = vector.load %arg3[%c104, %c0_15] : memref<512x256xf32, #tpu.memory_space<vmem>>, vector<8x256xf32>
    tpu.vector_store %arg3[%c104, %c0_15], %26 {strides = array<i32>} : memref<512x256xf32, #tpu.memory_space<vmem>>, vector<8x256xf32>,
    %c56_i32 = arith.constant 56 : i32
    %28 = tpu.dynamic_rotate %0 by %c56_i32 dim 1 : vector<8x256xf32>, i32 -> vector<8x256xf32>
    %c112 = arith.constant 112 : index
    %c0_16 = arith.constant 0 : index
    %29 = vector.load %arg3[%c112, %c0_16] : memref<512x256xf32, #tpu.memory_space<vmem>>, vector<8x256xf32>
    tpu.vector_store %arg3[%c112, %c0_16], %28 {strides = array<i32>} : memref<512x256xf32, #tpu.memory_space<vmem>>, vector<8x256xf32>,
    %c60_i32 = arith.constant 60 : i32
    %30 = tpu.dynamic_rotate %0 by %c60_i32 dim 1 : vector<8x256xf32>, i32 -> vector<8x256xf32>
    %c120 = arith.constant 120 : index
    %c0_17 = arith.constant 0 : index
    %31 = vector.load %arg3[%c120, %c0_17] : memref<512x256xf32, #tpu.memory_space<vmem>>, vector<8x256xf32>
    tpu.vector_store %arg3[%c120, %c0_17], %30 {strides = array<i32>} : memref<512x256xf32, #tpu.memory_space<vmem>>, vector<8x256xf32>,
    %c64_i32 = arith.constant 64 : i32
    %32 = tpu.dynamic_rotate %0 by %c64_i32 dim 1 : vector<8x256xf32>, i32 -> vector<8x256xf32>
    %c128 = arith.constant 128 : index
    %c0_18 = arith.constant 0 : index
    %33 = vector.load %arg3[%c128, %c0_18] : memref<512x256xf32, #tpu.memory_space<vmem>>, vector<8x256xf32>
    tpu.vector_store %arg3[%c128, %c0_18], %32 {strides = array<i32>} : memref<512x256xf32, #tpu.memory_space<vmem>>, vector<8x256xf32>,
    %c68_i32 = arith.constant 68 : i32
    %34 = tpu.dynamic_rotate %0 by %c68_i32 dim 1 : vector<8x256xf32>, i32 -> vector<8x256xf32>
    %c136 = arith.constant 136 : index
    %c0_19 = arith.constant 0 : index
    %35 = vector.load %arg3[%c136, %c0_19] : memref<512x256xf32, #tpu.memory_space<vmem>>, vector<8x256xf32>
    tpu.vector_store %arg3[%c136, %c0_19], %34 {strides = array<i32>} : memref<512x256xf32, #tpu.memory_space<vmem>>, vector<8x256xf32>,
    %c72_i32 = arith.constant 72 : i32
    %36 = tpu.dynamic_rotate %0 by %c72_i32 dim 1 : vector<8x256xf32>, i32 -> vector<8x256xf32>
    %c144 = arith.constant 144 : index
    %c0_20 = arith.constant 0 : index
    %37 = vector.load %arg3[%c144, %c0_20] : memref<512x256xf32, #tpu.memory_space<vmem>>, vector<8x256xf32>
    tpu.vector_store %arg3[%c144, %c0_20], %36 {strides = array<i32>} : memref<512x256xf32, #tpu.memory_space<vmem>>, vector<8x256xf32>,
    %c76_i32 = arith.constant 76 : i32
    %38 = tpu.dynamic_rotate %0 by %c76_i32 dim 1 : vector<8x256xf32>, i32 -> vector<8x256xf32>
    %c152 = arith.constant 152 : index
    %c0_21 = arith.constant 0 : index
    %39 = vector.load %arg3[%c152, %c0_21] : memref<512x256xf32, #tpu.memory_space<vmem>>, vector<8x256xf32>
    tpu.vector_store %arg3[%c152, %c0_21], %38 {strides = array<i32>} : memref<512x256xf32, #tpu.memory_space<vmem>>, vector<8x256xf32>,
    %c80_i32 = arith.constant 80 : i32
    %40 = tpu.dynamic_rotate %0 by %c80_i32 dim 1 : vector<8x256xf32>, i32 -> vector<8x256xf32>
    %c160 = arith.constant 160 : index
    %c0_22 = arith.constant 0 : index
    %41 = vector.load %arg3[%c160, %c0_22] : memref<512x256xf32, #tpu.memory_space<vmem>>, vector<8x256xf32>
    tpu.vector_store %arg3[%c160, %c0_22], %40 {strides = array<i32>} : memref<512x256xf32, #tpu.memory_space<vmem>>, vector<8x256xf32>,
    %c84_i32 = arith.constant 84 : i32
    %42 = tpu.dynamic_rotate %0 by %c84_i32 dim 1 : vector<8x256xf32>, i32 -> vector<8x256xf32>
    %c168 = arith.constant 168 : index
    %c0_23 = arith.constant 0 : index
    %43 = vector.load %arg3[%c168, %c0_23] : memref<512x256xf32, #tpu.memory_space<vmem>>, vector<8x256xf32>
    tpu.vector_store %arg3[%c168, %c0_23], %42 {strides = array<i32>} : memref<512x256xf32, #tpu.memory_space<vmem>>, vector<8x256xf32>,
    %c88_i32 = arith.constant 88 : i32
    %44 = tpu.dynamic_rotate %0 by %c88_i32 dim 1 : vector<8x256xf32>, i32 -> vector<8x256xf32>
    %c176 = arith.constant 176 : index
    %c0_24 = arith.constant 0 : index
    %45 = vector.load %arg3[%c176, %c0_24] : memref<512x256xf32, #tpu.memory_space<vmem>>, vector<8x256xf32>
    tpu.vector_store %arg3[%c176, %c0_24], %44 {strides = array<i32>} : memref<512x256xf32, #tpu.memory_space<vmem>>, vector<8x256xf32>,
    %c92_i32 = arith.constant 92 : i32
    %46 = tpu.dynamic_rotate %0 by %c92_i32 dim 1 : vector<8x256xf32>, i32 -> vector<8x256xf32>
    %c184 = arith.constant 184 : index
    %c0_25 = arith.constant 0 : index
    %47 = vector.load %arg3[%c184, %c0_25] : memref<512x256xf32, #tpu.memory_space<vmem>>, vector<8x256xf32>
    tpu.vector_store %arg3[%c184, %c0_25], %46 {strides = array<i32>} : memref<512x256xf32, #tpu.memory_space<vmem>>, vector<8x256xf32>,
    %c96_i32 = arith.constant 96 : i32
    %48 = tpu.dynamic_rotate %0 by %c96_i32 dim 1 : vector<8x256xf32>, i32 -> vector<8x256xf32>
    %c192 = arith.constant 192 : index
    %c0_26 = arith.constant 0 : index
    %49 = vector.load %arg3[%c192, %c0_26] : memref<512x256xf32, #tpu.memory_space<vmem>>, vector<8x256xf32>
    tpu.vector_store %arg3[%c192, %c0_26], %48 {strides = array<i32>} : memref<512x256xf32, #tpu.memory_space<vmem>>, vector<8x256xf32>,
    %c100_i32 = arith.constant 100 : i32
    %50 = tpu.dynamic_rotate %0 by %c100_i32 dim 1 : vector<8x256xf32>, i32 -> vector<8x256xf32>
    %c200 = arith.constant 200 : index
    %c0_27 = arith.constant 0 : index
    %51 = vector.load %arg3[%c200, %c0_27] : memref<512x256xf32, #tpu.memory_space<vmem>>, vector<8x256xf32>
    tpu.vector_store %arg3[%c200, %c0_27], %50 {strides = array<i32>} : memref<512x256xf32, #tpu.memory_space<vmem>>, vector<8x256xf32>,
    %c104_i32 = arith.constant 104 : i32
    %52 = tpu.dynamic_rotate %0 by %c104_i32 dim 1 : vector<8x256xf32>, i32 -> vector<8x256xf32>
    %c208 = arith.constant 208 : index
    %c0_28 = arith.constant 0 : index
    %53 = vector.load %arg3[%c208, %c0_28] : memref<512x256xf32, #tpu.memory_space<vmem>>, vector<8x256xf32>
    tpu.vector_store %arg3[%c208, %c0_28], %52 {strides = array<i32>} : memref<512x256xf32, #tpu.memory_space<vmem>>, vector<8x256xf32>,
    %c108_i32 = arith.constant 108 : i32
    %54 = tpu.dynamic_rotate %0 by %c108_i32 dim 1 : vector<8x256xf32>, i32 -> vector<8x256xf32>
    %c216 = arith.constant 216 : index
    %c0_29 = arith.constant 0 : index
    %55 = vector.load %arg3[%c216, %c0_29] : memref<512x256xf32, #tpu.memory_space<vmem>>, vector<8x256xf32>
    tpu.vector_store %arg3[%c216, %c0_29], %54 {strides = array<i32>} : memref<512x256xf32, #tpu.memory_space<vmem>>, vector<8x256xf32>,
    %c112_i32 = arith.constant 112 : i32
    %56 = tpu.dynamic_rotate %0 by %c112_i32 dim 1 : vector<8x256xf32>, i32 -> vector<8x256xf32>
    %c224 = arith.constant 224 : index
    %c0_30 = arith.constant 0 : index
    %57 = vector.load %arg3[%c224, %c0_30] : memref<512x256xf32, #tpu.memory_space<vmem>>, vector<8x256xf32>
    tpu.vector_store %arg3[%c224, %c0_30], %56 {strides = array<i32>} : memref<512x256xf32, #tpu.memory_space<vmem>>, vector<8x256xf32>,
    %c116_i32 = arith.constant 116 : i32
    %58 = tpu.dynamic_rotate %0 by %c116_i32 dim 1 : vector<8x256xf32>, i32 -> vector<8x256xf32>
    %c232 = arith.constant 232 : index
    %c0_31 = arith.constant 0 : index
    %59 = vector.load %arg3[%c232, %c0_31] : memref<512x256xf32, #tpu.memory_space<vmem>>, vector<8x256xf32>
    tpu.vector_store %arg3[%c232, %c0_31], %58 {strides = array<i32>} : memref<512x256xf32, #tpu.memory_space<vmem>>, vector<8x256xf32>,
    %c120_i32 = arith.constant 120 : i32
    %60 = tpu.dynamic_rotate %0 by %c120_i32 dim 1 : vector<8x256xf32>, i32 -> vector<8x256xf32>
    %c240 = arith.constant 240 : index
    %c0_32 = arith.constant 0 : index
    %61 = vector.load %arg3[%c240, %c0_32] : memref<512x256xf32, #tpu.memory_space<vmem>>, vector<8x256xf32>
    tpu.vector_store %arg3[%c240, %c0_32], %60 {strides = array<i32>} : memref<512x256xf32, #tpu.memory_space<vmem>>, vector<8x256xf32>,
    %c124_i32 = arith.constant 124 : i32
    %62 = tpu.dynamic_rotate %0 by %c124_i32 dim 1 : vector<8x256xf32>, i32 -> vector<8x256xf32>
    %c248 = arith.constant 248 : index
    %c0_33 = arith.constant 0 : index
    %63 = vector.load %arg3[%c248, %c0_33] : memref<512x256xf32, #tpu.memory_space<vmem>>, vector<8x256xf32>
    tpu.vector_store %arg3[%c248, %c0_33], %62 {strides = array<i32>} : memref<512x256xf32, #tpu.memory_space<vmem>>, vector<8x256xf32>,
    %c128_i32 = arith.constant 128 : i32
    %64 = tpu.dynamic_rotate %0 by %c128_i32 dim 1 : vector<8x256xf32>, i32 -> vector<8x256xf32>
    %c256 = arith.constant 256 : index
    %c0_34 = arith.constant 0 : index
    %65 = vector.load %arg3[%c256, %c0_34] : memref<512x256xf32, #tpu.memory_space<vmem>>, vector<8x256xf32>
    tpu.vector_store %arg3[%c256, %c0_34], %64 {strides = array<i32>} : memref<512x256xf32, #tpu.memory_space<vmem>>, vector<8x256xf32>,
    %c132_i32 = arith.constant 132 : i32
    %66 = tpu.dynamic_rotate %0 by %c132_i32 dim 1 : vector<8x256xf32>, i32 -> vector<8x256xf32>
    %c264 = arith.constant 264 : index
    %c0_35 = arith.constant 0 : index
    %67 = vector.load %arg3[%c264, %c0_35] : memref<512x256xf32, #tpu.memory_space<vmem>>, vector<8x256xf32>
    tpu.vector_store %arg3[%c264, %c0_35], %66 {strides = array<i32>} : memref<512x256xf32, #tpu.memory_space<vmem>>, vector<8x256xf32>,
    %c136_i32 = arith.constant 136 : i32
    %68 = tpu.dynamic_rotate %0 by %c136_i32 dim 1 : vector<8x256xf32>, i32 -> vector<8x256xf32>
    %c272 = arith.constant 272 : index
    %c0_36 = arith.constant 0 : index
    %69 = vector.load %arg3[%c272, %c0_36] : memref<512x256xf32, #tpu.memory_space<vmem>>, vector<8x256xf32>
    tpu.vector_store %arg3[%c272, %c0_36], %68 {strides = array<i32>} : memref<512x256xf32, #tpu.memory_space<vmem>>, vector<8x256xf32>,
    %c140_i32 = arith.constant 140 : i32
    %70 = tpu.dynamic_rotate %0 by %c140_i32 dim 1 : vector<8x256xf32>, i32 -> vector<8x256xf32>
    %c280 = arith.constant 280 : index
    %c0_37 = arith.constant 0 : index
    %71 = vector.load %arg3[%c280, %c0_37] : memref<512x256xf32, #tpu.memory_space<vmem>>, vector<8x256xf32>
    tpu.vector_store %arg3[%c280, %c0_37], %70 {strides = array<i32>} : memref<512x256xf32, #tpu.memory_space<vmem>>, vector<8x256xf32>,
    %c144_i32 = arith.constant 144 : i32
    %72 = tpu.dynamic_rotate %0 by %c144_i32 dim 1 : vector<8x256xf32>, i32 -> vector<8x256xf32>
    %c288 = arith.constant 288 : index
    %c0_38 = arith.constant 0 : index
    %73 = vector.load %arg3[%c288, %c0_38] : memref<512x256xf32, #tpu.memory_space<vmem>>, vector<8x256xf32>
    tpu.vector_store %arg3[%c288, %c0_38], %72 {strides = array<i32>} : memref<512x256xf32, #tpu.memory_space<vmem>>, vector<8x256xf32>,
    %c148_i32 = arith.constant 148 : i32
    %74 = tpu.dynamic_rotate %0 by %c148_i32 dim 1 : vector<8x256xf32>, i32 -> vector<8x256xf32>
    %c296 = arith.constant 296 : index
    %c0_39 = arith.constant 0 : index
    %75 = vector.load %arg3[%c296, %c0_39] : memref<512x256xf32, #tpu.memory_space<vmem>>, vector<8x256xf32>
    tpu.vector_store %arg3[%c296, %c0_39], %74 {strides = array<i32>} : memref<512x256xf32, #tpu.memory_space<vmem>>, vector<8x256xf32>,
    %c152_i32 = arith.constant 152 : i32
    %76 = tpu.dynamic_rotate %0 by %c152_i32 dim 1 : vector<8x256xf32>, i32 -> vector<8x256xf32>
    %c304 = arith.constant 304 : index
    %c0_40 = arith.constant 0 : index
    %77 = vector.load %arg3[%c304, %c0_40] : memref<512x256xf32, #tpu.memory_space<vmem>>, vector<8x256xf32>
    tpu.vector_store %arg3[%c304, %c0_40], %76 {strides = array<i32>} : memref<512x256xf32, #tpu.memory_space<vmem>>, vector<8x256xf32>,
    %c156_i32 = arith.constant 156 : i32
    %78 = tpu.dynamic_rotate %0 by %c156_i32 dim 1 : vector<8x256xf32>, i32 -> vector<8x256xf32>
    %c312 = arith.constant 312 : index
    %c0_41 = arith.constant 0 : index
    %79 = vector.load %arg3[%c312, %c0_41] : memref<512x256xf32, #tpu.memory_space<vmem>>, vector<8x256xf32>
    tpu.vector_store %arg3[%c312, %c0_41], %78 {strides = array<i32>} : memref<512x256xf32, #tpu.memory_space<vmem>>, vector<8x256xf32>,
    %c160_i32 = arith.constant 160 : i32
    %80 = tpu.dynamic_rotate %0 by %c160_i32 dim 1 : vector<8x256xf32>, i32 -> vector<8x256xf32>
    %c320 = arith.constant 320 : index
    %c0_42 = arith.constant 0 : index
    %81 = vector.load %arg3[%c320, %c0_42] : memref<512x256xf32, #tpu.memory_space<vmem>>, vector<8x256xf32>
    tpu.vector_store %arg3[%c320, %c0_42], %80 {strides = array<i32>} : memref<512x256xf32, #tpu.memory_space<vmem>>, vector<8x256xf32>,
    %c164_i32 = arith.constant 164 : i32
    %82 = tpu.dynamic_rotate %0 by %c164_i32 dim 1 : vector<8x256xf32>, i32 -> vector<8x256xf32>
    %c328 = arith.constant 328 : index
    %c0_43 = arith.constant 0 : index
    %83 = vector.load %arg3[%c328, %c0_43] : memref<512x256xf32, #tpu.memory_space<vmem>>, vector<8x256xf32>
    tpu.vector_store %arg3[%c328, %c0_43], %82 {strides = array<i32>} : memref<512x256xf32, #tpu.memory_space<vmem>>, vector<8x256xf32>,
    %c168_i32 = arith.constant 168 : i32
    %84 = tpu.dynamic_rotate %0 by %c168_i32 dim 1 : vector<8x256xf32>, i32 -> vector<8x256xf32>
    %c336 = arith.constant 336 : index
    %c0_44 = arith.constant 0 : index
    %85 = vector.load %arg3[%c336, %c0_44] : memref<512x256xf32, #tpu.memory_space<vmem>>, vector<8x256xf32>
    tpu.vector_store %arg3[%c336, %c0_44], %84 {strides = array<i32>} : memref<512x256xf32, #tpu.memory_space<vmem>>, vector<8x256xf32>,
    %c172_i32 = arith.constant 172 : i32
    %86 = tpu.dynamic_rotate %0 by %c172_i32 dim 1 : vector<8x256xf32>, i32 -> vector<8x256xf32>
    %c344 = arith.constant 344 : index
    %c0_45 = arith.constant 0 : index
    %87 = vector.load %arg3[%c344, %c0_45] : memref<512x256xf32, #tpu.memory_space<vmem>>, vector<8x256xf32>
    tpu.vector_store %arg3[%c344, %c0_45], %86 {strides = array<i32>} : memref<512x256xf32, #tpu.memory_space<vmem>>, vector<8x256xf32>,
    %c176_i32 = arith.constant 176 : i32
    %88 = tpu.dynamic_rotate %0 by %c176_i32 dim 1 : vector<8x256xf32>, i32 -> vector<8x256xf32>
    %c352 = arith.constant 352 : index
    %c0_46 = arith.constant 0 : index
    %89 = vector.load %arg3[%c352, %c0_46] : memref<512x256xf32, #tpu.memory_space<vmem>>, vector<8x256xf32>
    tpu.vector_store %arg3[%c352, %c0_46], %88 {strides = array<i32>} : memref<512x256xf32, #tpu.memory_space<vmem>>, vector<8x256xf32>,
    %c180_i32 = arith.constant 180 : i32
    %90 = tpu.dynamic_rotate %0 by %c180_i32 dim 1 : vector<8x256xf32>, i32 -> vector<8x256xf32>
    %c360 = arith.constant 360 : index
    %c0_47 = arith.constant 0 : index
    %91 = vector.load %arg3[%c360, %c0_47] : memref<512x256xf32, #tpu.memory_space<vmem>>, vector<8x256xf32>
    tpu.vector_store %arg3[%c360, %c0_47], %90 {strides = array<i32>} : memref<512x256xf32, #tpu.memory_space<vmem>>, vector<8x256xf32>,
    %c184_i32 = arith.constant 184 : i32
    %92 = tpu.dynamic_rotate %0 by %c184_i32 dim 1 : vector<8x256xf32>, i32 -> vector<8x256xf32>
    %c368 = arith.constant 368 : index
    %c0_48 = arith.constant 0 : index
    %93 = vector.load %arg3[%c368, %c0_48] : memref<512x256xf32, #tpu.memory_space<vmem>>, vector<8x256xf32>
    tpu.vector_store %arg3[%c368, %c0_48], %92 {strides = array<i32>} : memref<512x256xf32, #tpu.memory_space<vmem>>, vector<8x256xf32>,
    %c188_i32 = arith.constant 188 : i32
    %94 = tpu.dynamic_rotate %0 by %c188_i32 dim 1 : vector<8x256xf32>, i32 -> vector<8x256xf32>
    %c376 = arith.constant 376 : index
    %c0_49 = arith.constant 0 : index
    %95 = vector.load %arg3[%c376, %c0_49] : memref<512x256xf32, #tpu.memory_space<vmem>>, vector<8x256xf32>
    tpu.vector_store %arg3[%c376, %c0_49], %94 {strides = array<i32>} : memref<512x256xf32, #tpu.memory_space<vmem>>, vector<8x256xf32>,
    %c192_i32 = arith.constant 192 : i32
    %96 = tpu.dynamic_rotate %0 by %c192_i32 dim 1 : vector<8x256xf32>, i32 -> vector<8x256xf32>
    %c384 = arith.constant 384 : index
    %c0_50 = arith.constant 0 : index
    %97 = vector.load %arg3[%c384, %c0_50] : memref<512x256xf32, #tpu.memory_space<vmem>>, vector<8x256xf32>
    tpu.vector_store %arg3[%c384, %c0_50], %96 {strides = array<i32>} : memref<512x256xf32, #tpu.memory_space<vmem>>, vector<8x256xf32>,
    %c196_i32 = arith.constant 196 : i32
    %98 = tpu.dynamic_rotate %0 by %c196_i32 dim 1 : vector<8x256xf32>, i32 -> vector<8x256xf32>
    %c392 = arith.constant 392 : index
    %c0_51 = arith.constant 0 : index
    %99 = vector.load %arg3[%c392, %c0_51] : memref<512x256xf32, #tpu.memory_space<vmem>>, vector<8x256xf32>
    tpu.vector_store %arg3[%c392, %c0_51], %98 {strides = array<i32>} : memref<512x256xf32, #tpu.memory_space<vmem>>, vector<8x256xf32>,
    %c200_i32 = arith.constant 200 : i32
    %100 = tpu.dynamic_rotate %0 by %c200_i32 dim 1 : vector<8x256xf32>, i32 -> vector<8x256xf32>
    %c400 = arith.constant 400 : index
    %c0_52 = arith.constant 0 : index
    %101 = vector.load %arg3[%c400, %c0_52] : memref<512x256xf32, #tpu.memory_space<vmem>>, vector<8x256xf32>
    tpu.vector_store %arg3[%c400, %c0_52], %100 {strides = array<i32>} : memref<512x256xf32, #tpu.memory_space<vmem>>, vector<8x256xf32>,
    %c204_i32 = arith.constant 204 : i32
    %102 = tpu.dynamic_rotate %0 by %c204_i32 dim 1 : vector<8x256xf32>, i32 -> vector<8x256xf32>
    %c408 = arith.constant 408 : index
    %c0_53 = arith.constant 0 : index
    %103 = vector.load %arg3[%c408, %c0_53] : memref<512x256xf32, #tpu.memory_space<vmem>>, vector<8x256xf32>
    tpu.vector_store %arg3[%c408, %c0_53], %102 {strides = array<i32>} : memref<512x256xf32, #tpu.memory_space<vmem>>, vector<8x256xf32>,
    %c208_i32 = arith.constant 208 : i32
    %104 = tpu.dynamic_rotate %0 by %c208_i32 dim 1 : vector<8x256xf32>, i32 -> vector<8x256xf32>
    %c416 = arith.constant 416 : index
    %c0_54 = arith.constant 0 : index
    %105 = vector.load %arg3[%c416, %c0_54] : memref<512x256xf32, #tpu.memory_space<vmem>>, vector<8x256xf32>
    tpu.vector_store %arg3[%c416, %c0_54], %104 {strides = array<i32>} : memref<512x256xf32, #tpu.memory_space<vmem>>, vector<8x256xf32>,
    %c212_i32 = arith.constant 212 : i32
    %106 = tpu.dynamic_rotate %0 by %c212_i32 dim 1 : vector<8x256xf32>, i32 -> vector<8x256xf32>
    %c424 = arith.constant 424 : index
    %c0_55 = arith.constant 0 : index
    %107 = vector.load %arg3[%c424, %c0_55] : memref<512x256xf32, #tpu.memory_space<vmem>>, vector<8x256xf32>
    tpu.vector_store %arg3[%c424, %c0_55], %106 {strides = array<i32>} : memref<512x256xf32, #tpu.memory_space<vmem>>, vector<8x256xf32>,
    %c216_i32 = arith.constant 216 : i32
    %108 = tpu.dynamic_rotate %0 by %c216_i32 dim 1 : vector<8x256xf32>, i32 -> vector<8x256xf32>
    %c432 = arith.constant 432 : index
    %c0_56 = arith.constant 0 : index
    %109 = vector.load %arg3[%c432, %c0_56] : memref<512x256xf32, #tpu.memory_space<vmem>>, vector<8x256xf32>
    tpu.vector_store %arg3[%c432, %c0_56], %108 {strides = array<i32>} : memref<512x256xf32, #tpu.memory_space<vmem>>, vector<8x256xf32>,
    %c220_i32 = arith.constant 220 : i32
    %110 = tpu.dynamic_rotate %0 by %c220_i32 dim 1 : vector<8x256xf32>, i32 -> vector<8x256xf32>
    %c440 = arith.constant 440 : index
    %c0_57 = arith.constant 0 : index
    %111 = vector.load %arg3[%c440, %c0_57] : memref<512x256xf32, #tpu.memory_space<vmem>>, vector<8x256xf32>
    tpu.vector_store %arg3[%c440, %c0_57], %110 {strides = array<i32>} : memref<512x256xf32, #tpu.memory_space<vmem>>, vector<8x256xf32>,
    %c224_i32 = arith.constant 224 : i32
    %112 = tpu.dynamic_rotate %0 by %c224_i32 dim 1 : vector<8x256xf32>, i32 -> vector<8x256xf32>
    %c448 = arith.constant 448 : index
    %c0_58 = arith.constant 0 : index
    %113 = vector.load %arg3[%c448, %c0_58] : memref<512x256xf32, #tpu.memory_space<vmem>>, vector<8x256xf32>
    tpu.vector_store %arg3[%c448, %c0_58], %112 {strides = array<i32>} : memref<512x256xf32, #tpu.memory_space<vmem>>, vector<8x256xf32>,
    %c228_i32 = arith.constant 228 : i32
    %114 = tpu.dynamic_rotate %0 by %c228_i32 dim 1 : vector<8x256xf32>, i32 -> vector<8x256xf32>
    %c456 = arith.constant 456 : index
    %c0_59 = arith.constant 0 : index
    %115 = vector.load %arg3[%c456, %c0_59] : memref<512x256xf32, #tpu.memory_space<vmem>>, vector<8x256xf32>
    tpu.vector_store %arg3[%c456, %c0_59], %114 {strides = array<i32>} : memref<512x256xf32, #tpu.memory_space<vmem>>, vector<8x256xf32>,
    %c232_i32 = arith.constant 232 : i32
    %116 = tpu.dynamic_rotate %0 by %c232_i32 dim 1 : vector<8x256xf32>, i32 -> vector<8x256xf32>
    %c464 = arith.constant 464 : index
    %c0_60 = arith.constant 0 : index
    %117 = vector.load %arg3[%c464, %c0_60] : memref<512x256xf32, #tpu.memory_space<vmem>>, vector<8x256xf32>
    tpu.vector_store %arg3[%c464, %c0_60], %116 {strides = array<i32>} : memref<512x256xf32, #tpu.memory_space<vmem>>, vector<8x256xf32>,
    %c236_i32 = arith.constant 236 : i32
    %118 = tpu.dynamic_rotate %0 by %c236_i32 dim 1 : vector<8x256xf32>, i32 -> vector<8x256xf32>
    %c472 = arith.constant 472 : index
    %c0_61 = arith.constant 0 : index
    %119 = vector.load %arg3[%c472, %c0_61] : memref<512x256xf32, #tpu.memory_space<vmem>>, vector<8x256xf32>
    tpu.vector_store %arg3[%c472, %c0_61], %118 {strides = array<i32>} : memref<512x256xf32, #tpu.memory_space<vmem>>, vector<8x256xf32>,
    %c240_i32 = arith.constant 240 : i32
    %120 = tpu.dynamic_rotate %0 by %c240_i32 dim 1 : vector<8x256xf32>, i32 -> vector<8x256xf32>
    %c480 = arith.constant 480 : index
    %c0_62 = arith.constant 0 : index
    %121 = vector.load %arg3[%c480, %c0_62] : memref<512x256xf32, #tpu.memory_space<vmem>>, vector<8x256xf32>
    tpu.vector_store %arg3[%c480, %c0_62], %120 {strides = array<i32>} : memref<512x256xf32, #tpu.memory_space<vmem>>, vector<8x256xf32>,
    %c244_i32 = arith.constant 244 : i32
    %122 = tpu.dynamic_rotate %0 by %c244_i32 dim 1 : vector<8x256xf32>, i32 -> vector<8x256xf32>
    %c488 = arith.constant 488 : index
    %c0_63 = arith.constant 0 : index
    %123 = vector.load %arg3[%c488, %c0_63] : memref<512x256xf32, #tpu.memory_space<vmem>>, vector<8x256xf32>
    tpu.vector_store %arg3[%c488, %c0_63], %122 {strides = array<i32>} : memref<512x256xf32, #tpu.memory_space<vmem>>, vector<8x256xf32>,
    %c248_i32 = arith.constant 248 : i32
    %124 = tpu.dynamic_rotate %0 by %c248_i32 dim 1 : vector<8x256xf32>, i32 -> vector<8x256xf32>
    %c496 = arith.constant 496 : index
    %c0_64 = arith.constant 0 : index
    %125 = vector.load %arg3[%c496, %c0_64] : memref<512x256xf32, #tpu.memory_space<vmem>>, vector<8x256xf32>
    tpu.vector_store %arg3[%c496, %c0_64], %124 {strides = array<i32>} : memref<512x256xf32, #tpu.memory_space<vmem>>, vector<8x256xf32>,
    %c252_i32 = arith.constant 252 : i32
    %126 = tpu.dynamic_rotate %0 by %c252_i32 dim 1 : vector<8x256xf32>, i32 -> vector<8x256xf32>
    %c504 = arith.constant 504 : index
    %c0_65 = arith.constant 0 : index
    %127 = vector.load %arg3[%c504, %c0_65] : memref<512x256xf32, #tpu.memory_space<vmem>>, vector<8x256xf32>
    tpu.vector_store %arg3[%c504, %c0_65], %126 {strides = array<i32>} : memref<512x256xf32, #tpu.memory_space<vmem>>, vector<8x256xf32>,
    %c0_66 = arith.constant 0 : index
    %c0_67 = arith.constant 0 : index
    %128 = vector.load %arg0[%c0_66, %c0_67] : memref<8x512xf32, #tpu.memory_space<vmem>>, vector<8x512xf32>
    %c0_68 = arith.constant 0 : index
    %c0_69 = arith.constant 0 : index
    %129 = vector.load %arg3[%c0_68, %c0_69] : memref<512x256xf32, #tpu.memory_space<vmem>>, vector<512x256xf32>
    %cst = arith.constant dense<0.000000e+00> : vector<8x256xf32>
    %130 = tpu.matmul %128, %129, %cst {dimension_numbers = #tpu.dot_dimension_numbers<[1], [0], [0], [1], [0, 0, 1, 1], [], []>} : vector<8x512xf32>, vector<512x256xf32>, vector<8x256xf32> -> vector<8x256xf32>
    %c0_70 = arith.constant 0 : index
    %c0_71 = arith.constant 0 : index
    %131 = vector.load %arg2[%c0_70, %c0_71] : memref<8x256xf32, #tpu.memory_space<vmem>>, vector<8x256xf32>
    tpu.vector_store %arg2[%c0_70, %c0_71], %130 {strides = array<i32>} : memref<8x256xf32, #tpu.memory_space<vmem>>, vector<8x256xf32>,
    return
  }
}

</mosaic_0001>

<bundles_post_ra>
// kernel: tselfexpressive_forward.1
= control target key start
LH: loop header
LB: loop body
LE: loop exit
PB: predicated region body
PF: predicated region fallthrough
CT: control target
= control target key end

     0   :  { %s956_s13 = smov 4   ;;  %s957_s14 = smov 12   ;;  %v19_v5 = vlaneseq  ;;  %s1208_s1 = inlined_call_operand.vmem [shape: f32[8,256], index: 1, kind: input, shape index: {}]   ;;  %s1209_s0 = inlined_call_operand.vmem [shape: f32[8,512], index: 0, kind: input, shape index: {}]   ;;  %s1210_s2 = inlined_call_operand.vmem [shape: f32[8,256], index: 2, kind: output, shape index: {}]  }
   0x1   :  { %v1005_v0 = vld [vmem:[%s1208_s1] sm:$0xff]  ;;  %v1010_v1 = vld [vmem:[%s1208_s1 + $0x8] sm:$0xff]  ;;  %s958_s15 = smov 8   ;;  %s959_s16 = smov 16   ;;  %v363_v4 = vld [vmem:[%s1209_s0 + $0x18] sm:$0xff] }
   0x2   :  { %v1014_v2 = vpack.i.bf16 %v1010_v1, %v1005_v0  ;;  %s960_s17 = smov 20   ;;  %s961_s1 = smov 24   ;;  %v361_v3 = vld [vmem:[%s1209_s0 + $0x8] sm:$0xff]  ;;  %627 = vmatprep.mubr.f32.mxu0 %v363_v4  ;;  %v1053_v6 = vand.u32 127, %v19_v5 }
   0x3   :  { %s962_s18 = smov 28   ;;  %s963_s19 = smov 32   ;;  %556 = vmatprep.mubr.f32.mxu1 %v361_v3 }
   0x4   :  { %802 = vrot.lane.b32.xlu0 %v1014_v2, %s956_s13  ;;  %812 = vrot.lane.b32.xlu1 %v1014_v2, %s957_s14  ;;  %s964_s20 = smov 36   ;;  %s965_s21 = smov 40   ;;  %vm21_vm0 = vcmp.lt.s32.totalorder %v1053_v6, 4  ;;  %vm39_vm1 = vcmp.lt.s32.totalorder %v1053_v6, 12  ;;  %vm30_vm2 = vcmp.lt.s32.totalorder %v1053_v6, 8  ;;  %vm48_vm3 = vcmp.lt.s32.totalorder %v1053_v6, 16 }
   0x5   :  { %s966_s22 = smov 44   ;;  %s967_s23 = smov 48   ;;  %vm57_vm4 = vcmp.lt.s32.totalorder %v1053_v6, 20  ;;  %vm66_vm5 = vcmp.lt.s32.totalorder %v1053_v6, 24  ;;  %vm75_vm6 = vcmp.lt.s32.totalorder %v1053_v6, 28  ;;  %vm84_vm7 = vcmp.lt.s32.totalorder %v1053_v6, 32 }
   0x6   :  { %s968_s24 = smov 52   ;;  %s969_s25 = smov 56   ;;  %vm93_vm8 = vcmp.lt.s32.totalorder %v1053_v6, 36  ;;  %vm102_vm9 = vcmp.lt.s32.totalorder %v1053_v6, 40  ;;  %vm111_vm10 = vcmp.lt.s32.totalorder %v1053_v6, 44  ;;  %vm120_vm11 = vcmp.lt.s32.totalorder %v1053_v6, 48 }
   0x7   :  { %s970_s26 = smov 60   ;;  %s971_s27 = smov 64   ;;  %vm129_vm12 = vcmp.lt.s32.totalorder %v1053_v6, 52  ;;  %vm138_vm13 = vcmp.lt.s32.totalorder %v1053_v6, 56  ;;  %vm147_vm14 = vcmp.lt.s32.totalorder %v1053_v6, 60  ;;  %vm156_vm15 = vcmp.lt.s32.totalorder %v1053_v6, 64 }
   0x8   :  { %807 = vrot.lane.b32.xlu0 %v1014_v2, %s958_s15  ;;  %817 = vrot.lane.b32.xlu1 %v1014_v2, %s959_s16  ;;  %s972_s28 = smov 68   ;;  %s973_s29 = smov 72  }
   0x9   :  { %s974_s30 = smov 76   ;;  %s975_s3 = smov 80  }
   0xa   :  { %s976_s4 = smov 84   ;;  %s977_s5 = smov 88  }
   0xb   :  { %s978_s6 = smov 92   ;;  %s979_s7 = smov 96  }
   0xc   :  { %822 = vrot.lane.b32.xlu0 %v1014_v2, %s960_s17  ;;  %827 = vrot.lane.b32.xlu1 %v1014_v2, %s961_s1  ;;  %s980_s8 = smov 100   ;;  %s981_s9 = smov 104  }
   0xd   :  { %s982_s10 = smov 108   ;;  %s983_s11 = smov 112  }
   0xe   :  { %s984_s16 = smov 116   ;;  %s985_s17 = smov 120  }
   0xf   :  { %s986_s1 = smov 124  }
  0x10   :  { %832 = vrot.lane.b32.xlu0 %v1014_v2, %s962_s18  ;;  %837 = vrot.lane.b32.xlu1 %v1014_v2, %s963_s19 }
  0x14   :  { %842 = vrot.lane.b32.xlu0 %v1014_v2, %s964_s20  ;;  %847 = vrot.lane.b32.xlu1 %v1014_v2, %s965_s21 }
  0x18   :  { %852 = vrot.lane.b32.xlu0 %v1014_v2, %s966_s22  ;;  %857 = vrot.lane.b32.xlu1 %v1014_v2, %s967_s23 }
  0x1c   :  { %862 = vrot.lane.b32.xlu0 %v1014_v2, %s968_s24  ;;  %867 = vrot.lane.b32.xlu1 %v1014_v2, %s969_s25 }
  0x20   :  { %872 = vrot.lane.b32.xlu0 %v1014_v2, %s970_s26  ;;  %877 = vrot.lane.b32.xlu1 %v1014_v2, %s971_s27 }
  0x24   :  { %882 = vrot.lane.b32.xlu0 %v1014_v2, %s972_s28  ;;  %887 = vrot.lane.b32.xlu1 %v1014_v2, %s973_s29 }
  0x28   :  { %892 = vrot.lane.b32.xlu0 %v1014_v2, %s974_s30  ;;  %897 = vrot.lane.b32.xlu1 %v1014_v2, %s975_s3 }
  0x2c   :  { %902 = vrot.lane.b32.xlu0 %v1014_v2, %s976_s4  ;;  %907 = vrot.lane.b32.xlu1 %v1014_v2, %s977_s5 }
  0x30   :  { %912 = vrot.lane.b32.xlu0 %v1014_v2, %s978_s6  ;;  %917 = vrot.lane.b32.xlu1 %v1014_v2, %s979_s7 }
  0x34   :  { %922 = vrot.lane.b32.xlu0 %v1014_v2, %s980_s8  ;;  %927 = vrot.lane.b32.xlu1 %v1014_v2, %s981_s9 }
  0x38   :  { %932 = vrot.lane.b32.xlu0 %v1014_v2, %s982_s10  ;;  %937 = vrot.lane.b32.xlu1 %v1014_v2, %s983_s11 }
  0x3c   :  { %942 = vrot.lane.b32.xlu0 %v1014_v2, %s984_s16  ;;  %947 = vrot.lane.b32.xlu1 %v1014_v2, %s985_s17 }
  0x40   :  { %952 = vrot.lane.b32.xlu0 %v1014_v2, %s986_s1 }
  0x76   :  { %v803_v7 = vpop.permute.xlu0 %802  ;;  %v813_v8 = vpop.permute.xlu1 %812 }
  0x77   :  { %v805_v9 = vunpack.i.h.bf16 %v803_v7  ;;  %v804_v10 = vunpack.i.l.bf16 %v803_v7  ;;  %v815_v11 = vunpack.i.h.bf16 %v813_v8  ;;  %v814_v12 = vunpack.i.l.bf16 %v813_v8 }
  0x79   :  { %v22_v13 = vsel %vm21_vm0, %v804_v10, %v805_v9  ;;  %v23_v14 = vsel %vm21_vm0, %v805_v9, %v804_v10  ;;  %v40_v19 = vsel %vm39_vm1, %v814_v12, %v815_v11  ;;  %v41_v20 = vsel %vm39_vm1, %v815_v11, %v814_v12 }
  0x7a   :  { %v808_v15 = vpop.permute.xlu0 %807  ;;  %v640_v16 = vpack.c.bf16 %v22_v13, %v1010_v1  ;;  %v642_v17 = vpack.c.bf16 %v23_v14, %v1005_v0  ;;  %v818_v18 = vpop.permute.xlu1 %817  ;;  %vm165_vm0 = vcmp.lt.s32.totalorder %v1053_v6, 68  ;;  %vm174_vm1 = vcmp.lt.s32.totalorder %v1053_v6, 72 }
  0x7b   :  { %v810_v21 = vunpack.i.h.bf16 %v808_v15  ;;  %v809_v22 = vunpack.i.l.bf16 %v808_v15  ;;  %v820_v23 = vunpack.i.h.bf16 %v818_v18  ;;  %v819_v24 = vunpack.i.l.bf16 %v818_v18 }
  0x7c   :  { %641 = vmatprep.subr.bf16.mxu1 %v640_v16  ;;  %705 = vmatprep.subr.bf16.mxu0 %v642_v17 }
  0x7d   :  { %643 = vmatpush1.bf16.msra.mxu1 %v642_v17  ;;  %707 = vmatpush1.bf16.msra.mxu0 %v640_v16  ;;  %v31_v25 = vsel %vm30_vm2, %v809_v22, %v810_v21  ;;  %v32_v26 = vsel %vm30_vm2, %v810_v21, %v809_v22  ;;  %v49_v31 = vsel %vm48_vm3, %v819_v24, %v820_v23  ;;  %vm183_vm2 = vcmp.lt.s32.totalorder %v1053_v6, 76 }
  0x7e   :  { %v823_v27 = vpop.permute.xlu0 %822  ;;  %v644_v28 = vpack.c.bf16 %v40_v19, %v31_v25  ;;  %v646_v29 = vpack.c.bf16 %v41_v20, %v32_v26  ;;  %v828_v30 = vpop.permute.xlu1 %827  ;;  %v50_v32 = vsel %vm48_vm3, %v820_v23, %v819_v24  ;;  %vm192_vm3 = vcmp.lt.s32.totalorder %v1053_v6, 80 }
  0x7f   :  { %v825_v33 = vunpack.i.h.bf16 %v823_v27  ;;  %v824_v34 = vunpack.i.l.bf16 %v823_v27  ;;  %v830_v35 = vunpack.i.h.bf16 %v828_v30  ;;  %v829_v36 = vunpack.i.l.bf16 %v828_v30 }
  0x80   :  { %645 = vmatprep.subr.bf16.mxu1 %v644_v28  ;;  %709 = vmatprep.subr.bf16.mxu0 %v646_v29 }
  0x81   :  { %647 = vmatpush1.bf16.msra.mxu1 %v646_v29  ;;  %711 = vmatpush1.bf16.msra.mxu0 %v644_v28  ;;  %v58_v37 = vsel %vm57_vm4, %v824_v34, %v825_v33  ;;  %v59_v38 = vsel %vm57_vm4, %v825_v33, %v824_v34  ;;  %v67_v43 = vsel %vm66_vm5, %v829_v36, %v830_v35  ;;  %vm201_vm4 = vcmp.lt.s32.totalorder %v1053_v6, 84 }
  0x82   :  { %v833_v39 = vpop.permute.xlu0 %832  ;;  %v648_v40 = vpack.c.bf16 %v58_v37, %v49_v31  ;;  %v650_v41 = vpack.c.bf16 %v59_v38, %v50_v32  ;;  %v838_v42 = vpop.permute.xlu1 %837  ;;  %v68_v44 = vsel %vm66_vm5, %v830_v35, %v829_v36  ;;  %vm210_vm5 = vcmp.lt.s32.totalorder %v1053_v6, 88 }
  0x83   :  { %v835_v45 = vunpack.i.h.bf16 %v833_v39  ;;  %v834_v46 = vunpack.i.l.bf16 %v833_v39  ;;  %v840_v47 = vunpack.i.h.bf16 %v838_v42  ;;  %v839_v48 = vunpack.i.l.bf16 %v838_v42 }
  0x84   :  { %649 = vmatprep.subr.bf16.mxu1 %v648_v40  ;;  %713 = vmatprep.subr.bf16.mxu0 %v650_v41 }
  0x85   :  { %651 = vmatpush1.bf16.msra.mxu1 %v650_v41  ;;  %715 = vmatpush1.bf16.msra.mxu0 %v648_v40  ;;  %v76_v49 = vsel %vm75_vm6, %v834_v46, %v835_v45  ;;  %v77_v50 = vsel %vm75_vm6, %v835_v45, %v834_v46  ;;  %v85_v55 = vsel %vm84_vm7, %v839_v48, %v840_v47  ;;  %vm219_vm6 = vcmp.lt.s32.totalorder %v1053_v6, 92 }
  0x86   :  { %v843_v51 = vpop.permute.xlu0 %842  ;;  %v652_v52 = vpack.c.bf16 %v76_v49, %v67_v43  ;;  %v654_v53 = vpack.c.bf16 %v77_v50, %v68_v44  ;;  %v848_v54 = vpop.permute.xlu1 %847  ;;  %v86_v56 = vsel %vm84_vm7, %v840_v47, %v839_v48  ;;  %vm228_vm7 = vcmp.lt.s32.totalorder %v1053_v6, 96 }
  0x87   :  { %v845_v57 = vunpack.i.h.bf16 %v843_v51  ;;  %v844_v58 = vunpack.i.l.bf16 %v843_v51  ;;  %v850_v59 = vunpack.i.h.bf16 %v848_v54  ;;  %v849_v60 = vunpack.i.l.bf16 %v848_v54 }
  0x88   :  { %653 = vmatprep.subr.bf16.mxu1 %v652_v52  ;;  %717 = vmatprep.subr.bf16.mxu0 %v654_v53 }
  0x89   :  { %655 = vmatpush1.bf16.msra.mxu1 %v654_v53  ;;  %719 = vmatpush1.bf16.msra.mxu0 %v652_v52  ;;  %v94_v61 = vsel %vm93_vm8, %v844_v58, %v845_v57  ;;  %v95_v62 = vsel %vm93_vm8, %v845_v57, %v844_v58  ;;  %v103_v3 = vsel %vm102_vm9, %v849_v60, %v850_v59  ;;  %vm237_vm8 = vcmp.lt.s32.totalorder %v1053_v6, 100 }
  0x8a   :  { %v853_v63 = vpop.permute.xlu0 %852  ;;  %v656_v0 = vpack.c.bf16 %v94_v61, %v85_v55  ;;  %v658_v1 = vpack.c.bf16 %v95_v62, %v86_v56  ;;  %v858_v2 = vpop.permute.xlu1 %857  ;;  %v104_v4 = vsel %vm102_vm9, %v850_v59, %v849_v60  ;;  %vm246_vm9 = vcmp.lt.s32.totalorder %v1053_v6, 104 }
  0x8b   :  { %v855_v5 = vunpack.i.h.bf16 %v853_v63  ;;  %v854_v7 = vunpack.i.l.bf16 %v853_v63  ;;  %v860_v8 = vunpack.i.h.bf16 %v858_v2  ;;  %v859_v9 = vunpack.i.l.bf16 %v858_v2 }
  0x8c   :  { %657 = vmatprep.subr.bf16.mxu1 %v656_v0  ;;  %721 = vmatprep.subr.bf16.mxu0 %v658_v1 }
  0x8d   :  { %659 = vmatpush1.bf16.msra.mxu1 %v658_v1  ;;  %723 = vmatpush1.bf16.msra.mxu0 %v656_v0  ;;  %v112_v10 = vsel %vm111_vm10, %v854_v7, %v855_v5  ;;  %v113_v11 = vsel %vm111_vm10, %v855_v5, %v854_v7  ;;  %v121_v16 = vsel %vm120_vm11, %v859_v9, %v860_v8  ;;  %vm255_vm10 = vcmp.lt.s32.totalorder %v1053_v6, 108 }
  0x8e   :  { %v863_v12 = vpop.permute.xlu0 %862  ;;  %v660_v13 = vpack.c.bf16 %v112_v10, %v103_v3  ;;  %v662_v14 = vpack.c.bf16 %v113_v11, %v104_v4  ;;  %v868_v15 = vpop.permute.xlu1 %867  ;;  %v122_v17 = vsel %vm120_vm11, %v860_v8, %v859_v9  ;;  %vm264_vm11 = vcmp.lt.s32.totalorder %v1053_v6, 112 }
  0x8f   :  { %v865_v18 = vunpack.i.h.bf16 %v863_v12  ;;  %v864_v19 = vunpack.i.l.bf16 %v863_v12  ;;  %v870_v20 = vunpack.i.h.bf16 %v868_v15  ;;  %v869_v21 = vunpack.i.l.bf16 %v868_v15 }
  0x90   :  { %661 = vmatprep.subr.bf16.mxu1 %v660_v13  ;;  %725 = vmatprep.subr.bf16.mxu0 %v662_v14 }
  0x91   :  { %663 = vmatpush1.bf16.msra.mxu1 %v662_v14  ;;  %727 = vmatpush1.bf16.msra.mxu0 %v660_v13  ;;  %v130_v22 = vsel %vm129_vm12, %v864_v19, %v865_v18  ;;  %v131_v23 = vsel %vm129_vm12, %v865_v18, %v864_v19  ;;  %v139_v28 = vsel %vm138_vm13, %v869_v21, %v870_v20  ;;  %vm273_vm12 = vcmp.lt.s32.totalorder %v1053_v6, 116 }
  0x92   :  { %v873_v24 = vpop.permute.xlu0 %872  ;;  %v664_v25 = vpack.c.bf16 %v130_v22, %v121_v16  ;;  %v666_v26 = vpack.c.bf16 %v131_v23, %v122_v17  ;;  %v878_v27 = vpop.permute.xlu1 %877  ;;  %v140_v29 = vsel %vm138_vm13, %v870_v20, %v869_v21  ;;  %vm282_vm13 = vcmp.lt.s32.totalorder %v1053_v6, 120 }
  0x93   :  { %v875_v30 = vunpack.i.h.bf16 %v873_v24  ;;  %v874_v31 = vunpack.i.l.bf16 %v873_v24  ;;  %v880_v32 = vunpack.i.h.bf16 %v878_v27  ;;  %v879_v33 = vunpack.i.l.bf16 %v878_v27 }
  0x94   :  { %665 = vmatprep.subr.bf16.mxu1 %v664_v25  ;;  %729 = vmatprep.subr.bf16.mxu0 %v666_v26 }
  0x95   :  { %667 = vmatpush1.bf16.msra.mxu1 %v666_v26  ;;  %731 = vmatpush1.bf16.msra.mxu0 %v664_v25  ;;  %v148_v34 = vsel %vm147_vm14, %v874_v31, %v875_v30  ;;  %v149_v35 = vsel %vm147_vm14, %v875_v30, %v874_v31  ;;  %v157_v40 = vsel %vm156_vm15, %v879_v33, %v880_v32  ;;  %vm291_vm14 = vcmp.lt.s32.totalorder %v1053_v6, 124  ;;  %v360_v6 = vld [vmem:[%s1209_s0] sm:$0xff] }
  0x96   :  { %v883_v36 = vpop.permute.xlu0 %882  ;;  %v668_v37 = vpack.c.bf16 %v148_v34, %v139_v28  ;;  %v670_v38 = vpack.c.bf16 %v149_v35, %v140_v29  ;;  %v888_v39 = vpop.permute.xlu1 %887  ;;  %v158_v41 = vsel %vm156_vm15, %v880_v32, %v879_v33 }
  0x97   :  { %v885_v42 = vunpack.i.h.bf16 %v883_v36  ;;  %v884_v43 = vunpack.i.l.bf16 %v883_v36  ;;  %v890_v44 = vunpack.i.h.bf16 %v888_v39  ;;  %v889_v45 = vunpack.i.l.bf16 %v888_v39 }
  0x98   :  { %669 = vmatprep.subr.bf16.mxu1 %v668_v37  ;;  %733 = vmatprep.subr.bf16.mxu0 %v670_v38 }
  0x99   :  { %671 = vmatpush1.bf16.msra.mxu1 %v670_v38  ;;  %735 = vmatpush1.bf16.msra.mxu0 %v668_v37  ;;  %v166_v46 = vsel %vm165_vm0, %v884_v43, %v885_v42  ;;  %v167_v47 = vsel %vm165_vm0, %v885_v42, %v884_v43  ;;  %v175_v52 = vsel %vm174_vm1, %v889_v45, %v890_v44 }
  0x9a   :  { %v893_v48 = vpop.permute.xlu0 %892  ;;  %v672_v49 = vpack.c.bf16 %v166_v46, %v157_v40  ;;  %v674_v50 = vpack.c.bf16 %v167_v47, %v158_v41  ;;  %v898_v51 = vpop.permute.xlu1 %897  ;;  %v176_v53 = vsel %vm174_vm1, %v890_v44, %v889_v45 }
  0x9b   :  { %v895_v54 = vunpack.i.h.bf16 %v893_v48  ;;  %v894_v55 = vunpack.i.l.bf16 %v893_v48  ;;  %v900_v56 = vunpack.i.h.bf16 %v898_v51  ;;  %v899_v57 = vunpack.i.l.bf16 %v898_v51 }
  0x9c   :  { %673 = vmatprep.subr.bf16.mxu1 %v672_v49  ;;  %737 = vmatprep.subr.bf16.mxu0 %v674_v50 }
  0x9d   :  { %675 = vmatpush1.bf16.msra.mxu1 %v674_v50  ;;  %739 = vmatpush1.bf16.msra.mxu0 %v672_v49  ;;  %v184_v58 = vsel %vm183_vm2, %v894_v55, %v895_v54  ;;  %v185_v59 = vsel %vm183_vm2, %v895_v54, %v894_v55  ;;  %v193_v0 = vsel %vm192_vm3, %v899_v57, %v900_v56 }
  0x9e   :  { %v903_v60 = vpop.permute.xlu0 %902  ;;  %v676_v61 = vpack.c.bf16 %v184_v58, %v175_v52  ;;  %v678_v62 = vpack.c.bf16 %v185_v59, %v176_v53  ;;  %v908_v63 = vpop.permute.xlu1 %907  ;;  %v194_v1 = vsel %vm192_vm3, %v900_v56, %v899_v57 }
  0x9f   :  { %v905_v2 = vunpack.i.h.bf16 %v903_v60  ;;  %v904_v3 = vunpack.i.l.bf16 %v903_v60  ;;  %v910_v4 = vunpack.i.h.bf16 %v908_v63  ;;  %v909_v5 = vunpack.i.l.bf16 %v908_v63 }
  0xa0   :  { %677 = vmatprep.subr.bf16.mxu1 %v676_v61  ;;  %741 = vmatprep.subr.bf16.mxu0 %v678_v62 }
  0xa1   :  { %679 = vmatpush1.bf16.msra.mxu1 %v678_v62  ;;  %743 = vmatpush1.bf16.msra.mxu0 %v676_v61  ;;  %v202_v7 = vsel %vm201_vm4, %v904_v3, %v905_v2  ;;  %v203_v8 = vsel %vm201_vm4, %v905_v2, %v904_v3  ;;  %v211_v13 = vsel %vm210_vm5, %v909_v5, %v910_v4 }
  0xa2   :  { %v913_v9 = vpop.permute.xlu0 %912  ;;  %v680_v10 = vpack.c.bf16 %v202_v7, %v193_v0  ;;  %v682_v11 = vpack.c.bf16 %v203_v8, %v194_v1  ;;  %v918_v12 = vpop.permute.xlu1 %917  ;;  %v212_v14 = vsel %vm210_vm5, %v910_v4, %v909_v5  ;;  %v362_v4 = vld [vmem:[%s1209_s0 + $0x10] sm:$0xff] }
  0xa3   :  { %v915_v15 = vunpack.i.h.bf16 %v913_v9  ;;  %v914_v16 = vunpack.i.l.bf16 %v913_v9  ;;  %v920_v17 = vunpack.i.h.bf16 %v918_v12  ;;  %v919_v18 = vunpack.i.l.bf16 %v918_v12 }
  0xa4   :  { %681 = vmatprep.subr.bf16.mxu1 %v680_v10  ;;  %745 = vmatprep.subr.bf16.mxu0 %v682_v11 }
  0xa5   :  { %683 = vmatpush1.bf16.msra.mxu1 %v682_v11  ;;  %747 = vmatpush1.bf16.msra.mxu0 %v680_v10  ;;  %v220_v19 = vsel %vm219_vm6, %v914_v16, %v915_v15  ;;  %v221_v20 = vsel %vm219_vm6, %v915_v15, %v914_v16  ;;  %v229_v25 = vsel %vm228_vm7, %v919_v18, %v920_v17 }
  0xa6   :  { %v923_v21 = vpop.permute.xlu0 %922  ;;  %v684_v22 = vpack.c.bf16 %v220_v19, %v211_v13  ;;  %v686_v23 = vpack.c.bf16 %v221_v20, %v212_v14  ;;  %v928_v24 = vpop.permute.xlu1 %927  ;;  %v230_v26 = vsel %vm228_vm7, %v920_v17, %v919_v18 }
  0xa7   :  { %v925_v27 = vunpack.i.h.bf16 %v923_v21  ;;  %v924_v28 = vunpack.i.l.bf16 %v923_v21  ;;  %v930_v29 = vunpack.i.h.bf16 %v928_v24  ;;  %v929_v30 = vunpack.i.l.bf16 %v928_v24 }
  0xa8   :  { %685 = vmatprep.subr.bf16.mxu1 %v684_v22  ;;  %749 = vmatprep.subr.bf16.mxu0 %v686_v23 }
  0xa9   :  { %687 = vmatpush1.bf16.msra.mxu1 %v686_v23  ;;  %751 = vmatpush1.bf16.msra.mxu0 %v684_v22  ;;  %v238_v31 = vsel %vm237_vm8, %v924_v28, %v925_v27  ;;  %v239_v32 = vsel %vm237_vm8, %v925_v27, %v924_v28  ;;  %v247_v37 = vsel %vm246_vm9, %v929_v30, %v930_v29 }
  0xaa   :  { %v933_v33 = vpop.permute.xlu0 %932  ;;  %v688_v34 = vpack.c.bf16 %v238_v31, %v229_v25  ;;  %v690_v35 = vpack.c.bf16 %v239_v32, %v230_v26  ;;  %v938_v36 = vpop.permute.xlu1 %937  ;;  %v248_v38 = vsel %vm246_vm9, %v930_v29, %v929_v30 }
  0xab   :  { %v935_v39 = vunpack.i.h.bf16 %v933_v33  ;;  %v934_v40 = vunpack.i.l.bf16 %v933_v33  ;;  %v940_v41 = vunpack.i.h.bf16 %v938_v36  ;;  %v939_v42 = vunpack.i.l.bf16 %v938_v36 }
  0xac   :  { %689 = vmatprep.subr.bf16.mxu1 %v688_v34  ;;  %753 = vmatprep.subr.bf16.mxu0 %v690_v35 }
  0xad   :  { %691 = vmatpush1.bf16.msra.mxu1 %v690_v35  ;;  %755 = vmatpush1.bf16.msra.mxu0 %v688_v34  ;;  %v256_v43 = vsel %vm255_vm10, %v934_v40, %v935_v39  ;;  %v257_v44 = vsel %vm255_vm10, %v935_v39, %v934_v40  ;;  %v265_v49 = vsel %vm264_vm11, %v939_v42, %v940_v41 }
  0xae   :  { %v943_v45 = vpop.permute.xlu0 %942  ;;  %v692_v46 = vpack.c.bf16 %v256_v43, %v247_v37  ;;  %v694_v47 = vpack.c.bf16 %v257_v44, %v248_v38  ;;  %v948_v48 = vpop.permute.xlu1 %947  ;;  %v266_v50 = vsel %vm264_vm11, %v940_v41, %v939_v42 }
  0xaf   :  { %v945_v51 = vunpack.i.h.bf16 %v943_v45  ;;  %v944_v52 = vunpack.i.l.bf16 %v943_v45  ;;  %v950_v53 = vunpack.i.h.bf16 %v948_v48  ;;  %v949_v54 = vunpack.i.l.bf16 %v948_v48 }
  0xb0   :  { %693 = vmatprep.subr.bf16.mxu1 %v692_v46  ;;  %757 = vmatprep.subr.bf16.mxu0 %v694_v47 }
  0xb1   :  { %695 = vmatpush1.bf16.msra.mxu1 %v694_v47  ;;  %759 = vmatpush1.bf16.msra.mxu0 %v692_v46  ;;  %v274_v55 = vsel %vm273_vm12, %v944_v52, %v945_v51  ;;  %v275_v56 = vsel %vm273_vm12, %v945_v51, %v944_v52  ;;  %v283_v62 = vsel %vm282_vm13, %v949_v54, %v950_v53 }
  0xb2   :  { %v953_v57 = vpop.permute.xlu0 %952  ;;  %v696_v58 = vpack.c.bf16 %v274_v55, %v265_v49  ;;  %v698_v59 = vpack.c.bf16 %v275_v56, %v266_v50  ;;  %v284_v63 = vsel %vm282_vm13, %v950_v53, %v949_v54 }
  0xb3   :  { %v955_v60 = vunpack.i.h.bf16 %v953_v57  ;;  %v954_v61 = vunpack.i.l.bf16 %v953_v57 }
  0xb4   :  { %697 = vmatprep.subr.bf16.mxu1 %v696_v58  ;;  %761 = vmatprep.subr.bf16.mxu0 %v698_v59 }
  0xb5   :  { %699 = vmatpush1.bf16.msra.mxu1 %v698_v59  ;;  %763 = vmatpush1.bf16.msra.mxu0 %v696_v58  ;;  %v292_v0 = vsel %vm291_vm14, %v954_v61, %v955_v60  ;;  %v293_v1 = vsel %vm291_vm14, %v955_v60, %v954_v61 }
  0xb6   :  { %v700_v2 = vpack.c.bf16 %v292_v0, %v283_v62  ;;  %v702_v3 = vpack.c.bf16 %v293_v1, %v284_v63 }
  0xb8   :  { %701 = vmatprep.subr.bf16.mxu1 %v700_v2  ;;  %765 = vmatprep.subr.bf16.mxu0 %v702_v3 }
  0xb9   :  { %703 = vmatpush1.bf16.msra.mxu1 %v702_v3  ;;  %767 = vmatpush1.bf16.msra.mxu0 %v700_v2 }
  0xbc   :  { %557 = vmatmul.mubr.f32.vlgmr.msra.gmra.mrb[0].mxu1 %v360_v6  ;;  %628 = vmatmul.mubr.f32.vlgmr.msra.gmra.mrb[0].mxu0 %v362_v4 }
 0x18f   :  { %v558_v5 = vpop.f32.mrb[0].mxu1  ;;  %v629_v7 = vpop.f32.mrb[0].mxu0 }
 0x190   :  { %v630_v8 = vadd.f32 %v629_v7, %v558_v5  ;;  %v560_v9 = vpop.f32.mrb[1].mxu1  ;;  %v631_v10 = vpop.f32.mrb[1].mxu0 }
 0x191   :  { %v632_v11 = vadd.f32 %v631_v10, %v560_v9 }
 0x192   :  { %634 = vst [vmem:[%s1210_s2] sm:$0xff] %v630_v8 }
 0x193   :  { %635 = vst [vmem:[%s1210_s2 + $0x8] sm:$0xff] %v632_v11 }

</bundles_post_ra>
